<compile_context>
chip_gen: v6e
topology: v6e:2x2x1
jax: 0.10.0
libtpu: 0.0.40
codegen_flags: <defaults>
</compile_context>

<pallas_src>
import math
import functools

import jax
import jax.numpy as jnp
from jax.experimental import pallas as pl
from jax.experimental.pallas import tpu as pltpu


# ----------------------------------------------------------------------------
# Fused kernel: one grid step == `bb` batch elements, everything VMEM-resident.
# ----------------------------------------------------------------------------
def _fused_resnet_kernel(H, W, hid, num_blocks, bb, roll_np,
                         x_ref, cond_ref, w_in_ref, wc_ref, w_film_ref,
                         w_out_ref, b_out_ref, out_ref):
    HW = H * W
    L = bb * HW
    bf16 = jnp.bfloat16

    # ---- per-tap halo masks (period HW, so batch-packing along lanes is safe) ----
    pos = jax.lax.broadcasted_iota(jnp.int32, (1, L), 1)
    q = pos % HW
    h_idx = q // W
    w_idx = q % W
    masks = []
    for kh in range(3):
        for kw in range(3):
            oy, ox = kh - 1, kw - 1
            conds = []
            if oy == -1:
                conds.append(h_idx >= 1)
            if oy == 1:
                conds.append(h_idx <= H - 2)
            if ox == -1:
                conds.append(w_idx >= 1)
            if ox == 1:
                conds.append(w_idx <= W - 2)
            if conds:
                m = conds[0]
                for c in conds[1:]:
                    m = jnp.logical_and(m, c)
                masks.append(m)
            else:
                masks.append(None)

    def conv3x3(act_f32, get_w):
        """3x3 'same' conv in channel-major layout via 9 accumulating matmuls."""
        acc = None
        for tp in range(3 * 3):
            oy, ox = tp // 3 - 1, tp % 3 - 1
            s = oy * W + ox                           # read offset in flat HW
            if s == 0:
                xs = act_f32
            else:
                shift = (-s) % L if roll_np else s % L
                xs = pltpu.roll(act_f32, shift=shift, axis=1)   # XLU rotation
            if masks[tp] is not None:
                xs = jnp.where(masks[tp], xs, 0.0)              # zero the halo
            part = jnp.dot(get_w(tp), xs.astype(bf16),
                           preferred_element_type=jnp.float32)
            acc = part if acc is None else acc + part
        return acc                                              # (Cout, L) f32

    # ---- all FiLM gammas/betas in one matmul (bias folded via cond ones-row) ----
    gb = jnp.dot(w_film_ref[...], cond_ref[0],
                 preferred_element_type=jnp.float32).astype(bf16)   # (nb*4*hid, L)

    def film(hcm, blk, stage):
        base = (blk * 2 + stage) * 2 * hid
        gamma = gb[base:base + hid, :].astype(jnp.float32)
        beta = gb[base + hid:base + 2 * hid, :].astype(jnp.float32)
        return gamma * hcm + beta

    # ---- input conv (pre-im2col'd in wrapper, bias folded) + ReLU ----
    out = jnp.maximum(
        jnp.dot(w_in_ref[...], x_ref[0], preferred_element_type=jnp.float32),
        0.0)                                                        # (hid, L) f32

    # ---- FiLM ResBlocks (stride=1, in_planes == planes -> identity shortcut) ----
    for blk in range(num_blocks):
        h1 = conv3x3(out, lambda tp: wc_ref[(blk * 2 + 0) * 9 + tp])   # conv1
        h1 = jnp.maximum(film(h1, blk, 0), 0.0)                        # FiLM1 + ReLU
        h2 = conv3x3(h1, lambda tp: wc_ref[(blk * 2 + 1) * 9 + tp])    # conv2
        out = jnp.maximum(film(h2, blk, 1) + out, 0.0)                 # FiLM2 + skip + ReLU

    # ---- output conv (bias=True, no activation); lane-dense (out_ch, L) store ----
    y = conv3x3(out, lambda tp: w_out_ref[tp]) + b_out_ref[...]
    out_ref[0] = y.astype(out_ref.dtype)


# ----------------------------------------------------------------------------
# Parameter init (deterministic, synthetic) in PyTorch-like layouts:
#   conv weights OIHW, FiLM 1x1 conv weights (2*hid, cond_ch) with bias (2*hid,)
#   (first hid output channels = gamma, last hid = beta, matching torch.chunk).
# ----------------------------------------------------------------------------
def init_params(key, in_ch, hid, out_ch, cond_ch, tdim, num_blocks):
    def normal(k, shape, scale=0.05):
        return scale * jax.random.normal(k, shape, dtype=jnp.float32)

    keys = iter(jax.random.split(key, 8 + num_blocks * 6))
    params = {
        "time_w": normal(next(keys), (tdim, cond_ch)),
        "time_b": normal(next(keys), (cond_ch,), 0.01),
        "in_w": normal(next(keys), (hid, in_ch, 3, 3)),
        "in_b": normal(next(keys), (hid,), 0.01),
        "out_w": normal(next(keys), (out_ch, hid, 3, 3)),
        "out_b": normal(next(keys), (out_ch,), 0.01),
        "blocks": [],
    }
    for _ in range(num_blocks):
        params["blocks"].append({
            "conv1_w": normal(next(keys), (hid, hid, 3, 3)),
            "conv2_w": normal(next(keys), (hid, hid, 3, 3)),
            "film1_w": normal(next(keys), (2 * hid, cond_ch)),
            "film1_b": normal(next(keys), (2 * hid,), 0.01),
            "film2_w": normal(next(keys), (2 * hid, cond_ch)),
            "film2_b": normal(next(keys), (2 * hid,), 0.01),
        })
    return params


def _pack_for_kernel(params):
    """Repack OIHW weights into the channel-major per-tap kernel layout (bf16)."""
    bf16 = jnp.bfloat16
    hid, in_ch = params["in_w"].shape[0], params["in_w"].shape[1]

    # input conv: (hid, in_ch, 3, 3) -> (hid, 9*in_ch) tap-major, + bias column
    w_in = params["in_w"].transpose(0, 2, 3, 1).reshape(hid, 9 * in_ch)
    w_in = jnp.concatenate([w_in, params["in_b"][:, None]], axis=1).astype(bf16)

    # hidden convs: per-tap (Cout, Cin) matrices stacked as (nb*2*9, hid, hid)
    taps = []
    for blk in params["blocks"]:
        for w in (blk["conv1_w"], blk["conv2_w"]):
            for kh in range(3):
                for kw in range(3):
                    taps.append(w[:, :, kh, kw])
    wc = jnp.stack(taps, axis=0).astype(bf16)

    # FiLM: rows [blk0: film1(gamma|beta), film2(gamma|beta), blk1: ...], bias column
    films_w = [w for blk in params["blocks"] for w in (blk["film1_w"], blk["film2_w"])]
    films_b = [b for blk in params["blocks"] for b in (blk["film1_b"], blk["film2_b"])]
    w_film = jnp.concatenate(films_w, axis=0)
    b_film = jnp.concatenate(films_b, axis=0)
    w_film = jnp.concatenate([w_film, b_film[:, None]], axis=1).astype(bf16)

    # output conv: per-tap (out_ch, hid) stacked as (9, out_ch, hid); bias (out_ch, 1)
    ow = params["out_w"]
    w_out = jnp.stack([ow[:, :, kh, kw] for kh in range(3) for kw in range(3)],
                      axis=0).astype(bf16)
    b_out = params["out_b"][:, None].astype(jnp.float32)
    return w_in, wc, w_film, w_out, b_out


def _time_cond(params, t, tdim):
    """SinusoidalPosEmb + Linear + ReLU (tiny per-batch glue, stays in XLA)."""
    half = tdim // 2
    freqs = jnp.exp(jnp.arange(half, dtype=jnp.float32)
                    * -(math.log(10000.0) / (half - 1)))
    emb = t.astype(jnp.float32)[:, None] * freqs[None, :]
    t_embed = jnp.concatenate([jnp.sin(emb), jnp.cos(emb)], axis=-1)
    return jnp.maximum(t_embed @ params["time_w"] + params["time_b"], 0.0)


def _choose_bb(B):
    """Largest divisor of B that keeps grid length >= 2 (v7x: 2 TCs) and <= 8."""
    best = 1
    for d in range(1, B + 1):
        if B % d == 0 and B // d >= 2 and d <= 8:
            best = max(best, d)
    return best


def _probe_roll_sign():
    """Tiny one-off kernel: does pltpu.roll follow np.roll's shift convention?"""
    def k(x_ref, o_ref):
        o_ref[...] = pltpu.roll(x_ref[...], shift=1, axis=1)
    x = jnp.arange(8 * 128, dtype=jnp.float32).reshape(8, 128)
    y = pl.pallas_call(k, out_shape=jax.ShapeDtypeStruct((8, 128), jnp.float32))(x)
    return bool(float(y[0, 0]) == 127.0)   # np.roll(x,1)[0,0] == x[0,127]


# ----------------------------------------------------------------------------
# Full forward pass (NCHW in / NCHW out, matching the PyTorch module).
# ----------------------------------------------------------------------------
@functools.partial(jax.jit, static_argnames=("time_embedding_dim", "roll_matches_numpy"))
def conditional_resnet2d(params, x_nchw, t, cond_nchw, *, time_embedding_dim=16,
                         roll_matches_numpy=True):
    B, in_ch, H, W = x_nchw.shape
    cond_ch = cond_nchw.shape[1]
    hid = params["in_w"].shape[0]
    out_ch = params["out_w"].shape[0]
    num_blocks = len(params["blocks"])
    HW = H * W
    bf16 = jnp.bfloat16

    # combined cond = cond + broadcast time-cond  (channel-major, + ones row for bias)
    t_cond = _time_cond(params, t, time_embedding_dim)                   # (B, cond_ch)
    cond_cm = (cond_nchw.astype(jnp.float32)
               + t_cond[:, :, None, None]).reshape(B, cond_ch, HW)

    # pre-im2col the tiny input conv: (B, 9*in_ch, HW), + ones row for folded bias
    xpad = jnp.pad(x_nchw.astype(jnp.float32), ((0, 0), (0, 0), (1, 1), (1, 1)))
    patches = jnp.stack([xpad[:, :, kh:kh + H, kw:kw + W]
                         for kh in range(3) for kw in range(3)], axis=1)
    x_cm = patches.reshape(B, 9 * in_ch, HW)

    ones = jnp.ones((B, 1, HW), jnp.float32)
    x_aug = jnp.concatenate([x_cm, ones], axis=1).astype(bf16)           # (B, 9*in_ch+1, HW)
    cond_aug = jnp.concatenate([cond_cm, ones], axis=1).astype(bf16)     # (B, cond_ch+1, HW)

    w_in, wc, w_film, w_out, b_out = _pack_for_kernel(params)

    # batch blocking: bb elements concatenated along the lane (HW) axis per step
    bb = _choose_bb(B)
    nsteps = B // bb
    L = bb * HW

    def pack_batch(a):   # (B, C, HW) -> (nsteps, C, bb*HW)
        C = a.shape[1]
        return a.reshape(nsteps, bb, C, HW).transpose(0, 2, 1, 3).reshape(nsteps, C, L)

    x_p = pack_batch(x_aug)
    cond_p = pack_batch(cond_aug)

    kernel = functools.partial(_fused_resnet_kernel, H, W, hid, num_blocks, bb,
                               roll_matches_numpy)

    out_p = pl.pallas_call(
        kernel,
        out_shape=jax.ShapeDtypeStruct((nsteps, out_ch, L), jnp.float32),
        grid_spec=pltpu.PrefetchScalarGridSpec(
            num_scalar_prefetch=0,
            grid=(nsteps,),
            in_specs=[
                pl.BlockSpec((1, 9 * in_ch + 1, L), lambda b: (b, 0, 0)),
                pl.BlockSpec((1, cond_ch + 1, L), lambda b: (b, 0, 0)),
                pl.BlockSpec((hid, 9 * in_ch + 1), lambda b: (0, 0)),
                pl.BlockSpec((num_blocks * 2 * 9, hid, hid), lambda b: (0, 0, 0)),
                pl.BlockSpec((num_blocks * 4 * hid, cond_ch + 1), lambda b: (0, 0)),
                pl.BlockSpec((9, out_ch, hid), lambda b: (0, 0, 0)),
                pl.BlockSpec((out_ch, 1), lambda b: (0, 0)),
            ],
            out_specs=pl.BlockSpec((1, out_ch, L), lambda b: (b, 0, 0)),
        ),
        compiler_params=pltpu.CompilerParams(dimension_semantics=("parallel",)),
    )(x_p, cond_p, w_in, wc, w_film, w_out, b_out)

    # (nsteps, out_ch, bb*HW) -> (B, out_ch, H, W)   (already channel-major / NCHW)
    out = out_p.reshape(nsteps, out_ch, bb, HW).transpose(0, 2, 1, 3)
    return out.reshape(B, out_ch, H, W)


# ----------------------------------------------------------------------------
# Pure-JAX f32 reference (for tolerance validation).
# ----------------------------------------------------------------------------
@functools.partial(jax.jit, static_argnames=("time_embedding_dim",))
def _reference_forward(params, x, t, cond, *, time_embedding_dim=16):
    hid = params["in_w"].shape[0]
    t_cond = _time_cond(params, t, time_embedding_dim)
    c = cond.astype(jnp.float32) + t_cond[:, :, None, None]

    def conv3x3(a, w, b=None):
        y = jax.lax.conv_general_dilated(a, w, (1, 1), "SAME",
                                         dimension_numbers=("NCHW", "OIHW", "NCHW"))
        return y if b is None else y + b[None, :, None, None]

    def film(h, w, b):
        f = jnp.einsum("oc,bchw->bohw", w, c) + b[None, :, None, None]
        return f[:, :hid] * h + f[:, hid:]

    out = jax.nn.relu(conv3x3(x.astype(jnp.float32), params["in_w"], params["in_b"]))
    for blk in params["blocks"]:
        h = jax.nn.relu(film(conv3x3(out, blk["conv1_w"]), blk["film1_w"], blk["film1_b"]))
        h = film(conv3x3(h, blk["conv2_w"]), blk["film2_w"], blk["film2_b"])
        out = jax.nn.relu(h + out)
    return conv3x3(out, params["out_w"], params["out_b"])


if __name__ == "__main__":
    B, IN_CH, HID, OUT_CH, COND_CH, TDIM, H, W = 2, 4, 32, 4, 8, 16, 16, 16
    NUM_BLOCKS = 3

    key = jax.random.PRNGKey(0)
    k_params, k_x, k_cond, k_t = jax.random.split(key, 4)

    params = init_params(k_params, IN_CH, HID, OUT_CH, COND_CH, TDIM, NUM_BLOCKS)
    x = jax.random.normal(k_x, (B, IN_CH, H, W), dtype=jnp.float32)
    cond = jax.random.normal(k_cond, (B, COND_CH, H, W), dtype=jnp.float32)
    t = jax.random.randint(k_t, (B,), 0, 1000, dtype=jnp.int32)

    roll_np = _probe_roll_sign()   # pin pltpu.roll's shift convention on this build

    out = conditional_resnet2d(params, x, t, cond, time_embedding_dim=TDIM,
                               roll_matches_numpy=roll_np)
    out = jax.block_until_ready(out)
    assert out.shape == (B, OUT_CH, H, W)
    assert bool(jnp.all(jnp.isfinite(out)))

    ref = jax.block_until_ready(
        _reference_forward(params, x, t, cond, time_embedding_dim=TDIM))
    rel_err = float(jnp.max(jnp.abs(out - ref)) / (jnp.max(jnp.abs(ref)) + 1e-6))
    assert rel_err < 5e-2, f"mismatch vs f32 reference: rel_err={rel_err}"

    print("KERNEL_OK")
</pallas_src>

<mosaic_0001>
module attributes {stable_mosaic.version = 11 : i64} {
  func.func @k(%arg0: memref<8x128xf32, #tpu.memory_space<vmem>>, %arg1: memref<8x128xf32, #tpu.memory_space<vmem>>) attributes {dimension_semantics = [], scalar_prefetch = 0 : i64, scratch_operands = 0 : i64, tpu.core_type = #tpu.core_type<tc>} {
    %c0 = arith.constant 0 : index
    %c0_0 = arith.constant 0 : index
    %0 = vector.load %arg0[%c0, %c0_0] : memref<8x128xf32, #tpu.memory_space<vmem>>, vector<8x128xf32>
    %c1_i32 = arith.constant 1 : i32
    %1 = tpu.dynamic_rotate %0 by %c1_i32 dim 1 : vector<8x128xf32>, i32 -> vector<8x128xf32>
    %c0_1 = arith.constant 0 : index
    %c0_2 = arith.constant 0 : index
    %2 = vector.load %arg1[%c0_1, %c0_2] : memref<8x128xf32, #tpu.memory_space<vmem>>, vector<8x128xf32>
    tpu.vector_store %arg1[%c0_1, %c0_2], %1 {strides = array<i32>} : memref<8x128xf32, #tpu.memory_space<vmem>>, vector<8x128xf32>,
    return
  }
}

</mosaic_0001>

<bundles_post_ra>
// kernel: tpu_custom_call.1
= control target key start
LH: loop header
LB: loop body
LE: loop exit
PB: predicated region body
PF: predicated region fallthrough
CT: control target
= control target key end

     0   :  { %6 = vsyncpa [#allocation3], 0  ;;  %s106_s0 = inlined_call_operand.hbm [shape: f32[8,128], index: 0, kind: input, shape index: {}]   ;;  %s107_s1 = inlined_call_operand.hbm [shape: f32[8,128], index: 1, kind: output, shape index: {}]  }
   0x1   :  { %7 = vsyncpa [#allocation4], 0  ;;  %s87_s6 = smov [#allocation2]  }
   0x2   :  { %s14_s7 = sshll.u32 %s87_s6, 4  ;;  %s15_s7 = int_to_ptr.vmem [resolvable:$true] %s14_s7 }
   0x3   :  { %s51_s8 = scalar_lea.vmem %s15_s7, 128  ;;  %p56_p1 = scmp.lt.s32.totalorder %s15_s7, %s15_s7 }
   0x4   :  { %p52_p0 = scmp.ne.s32.totalorder %s15_s7, %s51_s8  ;;  %p57_p2 = scmp.lt.s32.totalorder %s51_s8, %s51_s8 }
   0x6   :  { %p58_p3 = por %p57_p2, %p56_p1 }
   0x8   :  { %p59_p4 = pnand %p58_p3, %p52_p0 }
   0xa   :  { %62 = shalt.err (!%p59_p4)
}
   0xb   :  { %17 = dma.hbm_to_vmem [thread:$0]  %s106_s0, 128, %s15_s7, [#allocation3]  }
   0xc   :  { %83 = dma.done.wait [#allocation3], 128  }
   0xd   :  { %84 = vsyncadd [#allocation3], 4294967168  ;;  %v21_v0 = vld [vmem:[#allocation2] sm:$0xff]  ;;  %s88_s11 = smov 1   ;;  %s89_s12 = smov [#allocation5]  }
   0xe   :  { %22 = vrot.lane.b32.xlu0 %v21_v0, %s88_s11  ;;  %s31_s13 = sshll.u32 %s89_s12, 4  ;;  %s32_s13 = int_to_ptr.vmem [resolvable:$true] %s31_s13 }
   0xf   :  { %s63_s14 = scalar_lea.vmem %s32_s13, 128  ;;  %p68_p6 = scmp.lt.s32.totalorder %s32_s13, %s32_s13 }
  0x10   :  { %p64_p5 = scmp.ne.s32.totalorder %s32_s13, %s63_s14  ;;  %p69_p7 = scmp.lt.s32.totalorder %s63_s14, %s63_s14 }
  0x12   :  { %p70_p8 = por %p69_p7, %p68_p6 }
  0x14   :  { %p71_p9 = pnand %p70_p8, %p64_p5 }
  0x80   :  { %v23_v1 = vpop.permute.xlu0 %22 }
  0x81   :  { %24 = vst [vmem:[#allocation5] sm:$0xff] %v23_v1 }
  0x82   :  { %74 = shalt.err (!%p71_p9)
}
  0x83   :  { %34 = dma.vmem_to_hbm [thread:$0]  %s32_s13, 128, %s107_s1, [#allocation4]  }
  0x84   :  { %85 = dma.done.wait [#allocation4], 128  }
  0x85   :  { %86 = vsyncadd [#allocation4], 4294967168 }
  0x86   :  { %38 = vsyncpa [#allocation3], 1 }
  0x87   :  { %39 = vsyncpa [#allocation4], 1 }

</bundles_post_ra>
